<compile_context>
chip_gen: v6e
topology: v6e:2x2x1
jax: 0.10.0
libtpu: 0.0.40
codegen_flags: <defaults>
</compile_context>

<pallas_src>
import jax
import jax.numpy as jnp
from jax.experimental import pallas as pl
from jax.experimental.pallas import tpu as pltpu


def mlp_softmax_kernel(x_ref, w1_ref, b1_ref, w2_ref, b2_ref, o_ref):
    # Cast x to bf16 on the VPU (input is DMA'd in its native dtype).
    x = x_ref[...].astype(jnp.bfloat16)

    # Hidden layer: Linear + ReLU. bf16 MXU operands, f32 accumulate/epilogue.
    h = jnp.dot(x, w1_ref[...], preferred_element_type=jnp.float32) + b1_ref[...]
    h = jnp.maximum(h, 0.0)

    # Output layer: Linear. Padded output columns carry bias -1e30.
    logits = jnp.dot(h.astype(jnp.bfloat16), w2_ref[...],
                     preferred_element_type=jnp.float32) + b2_ref[...]

    # Softmax over last dim (torch F.softmax on 2D defaults to dim=1).
    # exp(-1e30 - m) underflows to exactly 0, so padded lanes contribute
    # nothing to the max or the denominator.
    m = jnp.max(logits, axis=-1, keepdims=True)
    e = jnp.exp(logits - m)
    denom = jnp.sum(e, axis=-1, keepdims=True)
    o_ref[...] = (e * pl.reciprocal(denom, approx=True)).astype(o_ref.dtype)


def _round_up(n, m):
    return ((n + m - 1) // m) * m


def _has_two_tensorcores():
    # v7x has 2 TensorCores per chip fed by sharding "parallel" grid axes.
    try:
        kind = jax.devices()[0].device_kind.lower()
    except Exception:
        return False
    return "v7" in kind


def prepare_params(w1, b1, w2, b2):
    """One-time padding + bf16 cast of the parameters (hoisted out of forward).

    w1: (F, H), b1: (H,) or (1, H), w2: (H, O), b2: (O,) or (1, O)
    """
    F, H = w1.shape
    O = w2.shape[1]
    HP = max(128, _round_up(H, 128))
    OP = max(128, _round_up(O, 128))

    w1p = jnp.zeros((F, HP), jnp.bfloat16).at[:, :H].set(w1.astype(jnp.bfloat16))
    b1p = jnp.zeros((1, HP), jnp.float32).at[:, :H].set(
        b1.reshape(1, H).astype(jnp.float32))
    w2p = jnp.zeros((HP, OP), jnp.bfloat16).at[:H, :O].set(w2.astype(jnp.bfloat16))
    b2p = jnp.full((1, OP), -1e30, jnp.float32).at[:, :O].set(
        b2.reshape(1, O).astype(jnp.float32))

    return {"w1": w1p, "b1": b1p, "w2": w2p, "b2": b2p,
            "n_feature": F, "n_output": O}


def net_forward(x, params, *, block_b=1024, out_dtype=jnp.bfloat16):
    """y = softmax(relu(x @ w1 + b1) @ w2 + b2), fused in one Pallas kernel."""
    w1p, b1p, w2p, b2p = params["w1"], params["b1"], params["w2"], params["b2"]
    B, F = x.shape
    assert F == params["n_feature"]
    HP = w1p.shape[1]
    OP = w2p.shape[1]
    O = params["n_output"]

    # Batch tile: as large as possible (amortizes ~0.35 us/grid-step) -- VMEM
    # is a non-issue at <1 MiB per step on every generation.
    TB = min(block_b, _round_up(B, 8))
    # v7x: keep the parallel grid >= 2 steps so both TensorCores get work.
    if _has_two_tensorcores() and B >= 16 and pl.cdiv(B, TB) < 2:
        TB = _round_up(pl.cdiv(B, 2), 8)

    BP = pl.cdiv(B, TB) * TB
    # Only touch x if the batch is ragged (common case: no extra HBM pass).
    xp = x if BP == B else jnp.pad(x, ((0, BP - B), (0, 0)))

    grid = (BP // TB,)

    flops = 2 * BP * (F * HP + HP * OP)
    transcendentals = BP * OP  # exp in softmax
    bytes_accessed = (xp.size * xp.dtype.itemsize
                      + w1p.size * 2 + w2p.size * 2
                      + b1p.size * 4 + b2p.size * 4
                      + BP * OP * jnp.dtype(out_dtype).itemsize)

    out = pl.pallas_call(
        mlp_softmax_kernel,
        out_shape=jax.ShapeDtypeStruct((BP, OP), out_dtype),
        grid=grid,
        in_specs=[
            pl.BlockSpec((TB, F), lambda i: (i, 0)),     # x: tiled over batch
            pl.BlockSpec((F, HP), lambda i: (0, 0)),     # w1: resident
            pl.BlockSpec((1, HP), lambda i: (0, 0)),     # b1: resident
            pl.BlockSpec((HP, OP), lambda i: (0, 0)),    # w2: resident
            pl.BlockSpec((1, OP), lambda i: (0, 0)),     # b2: resident
        ],
        out_specs=pl.BlockSpec((TB, OP), lambda i: (i, 0)),  # lane-dense store
        compiler_params=pltpu.CompilerParams(
            dimension_semantics=("parallel",)),
        cost_estimate=pl.CostEstimate(
            flops=flops,
            transcendentals=transcendentals,
            bytes_accessed=bytes_accessed),
    )(xp, w1p, b1p, w2p, b2p)

    # Strip batch/output padding (B x O elements only) and return f32 probs.
    return out[:B, :O].astype(jnp.float32)


if __name__ == "__main__":
    n_feature, n_hidden, n_output = 32, 64, 16
    batch = 8

    key = jax.random.PRNGKey(0)
    kx, k1, k2, k3, k4 = jax.random.split(key, 5)

    x = jax.random.normal(kx, (batch, n_feature), dtype=jnp.float32)

    # Deterministic parameter init (uniform, torch-Linear-like scale).
    bound1 = 1.0 / (n_feature ** 0.5)
    w1 = jax.random.uniform(k1, (n_feature, n_hidden), jnp.float32, -bound1, bound1)
    b1 = jax.random.uniform(k2, (n_hidden,), jnp.float32, -bound1, bound1)
    bound2 = 1.0 / (n_hidden ** 0.5)
    w2 = jax.random.uniform(k3, (n_hidden, n_output), jnp.float32, -bound2, bound2)
    b2 = jax.random.uniform(k4, (n_output,), jnp.float32, -bound2, bound2)

    # One-time parameter padding/casts (hoisted out of the forward path).
    params = prepare_params(w1, b1, w2, b2)
    fwd = jax.jit(lambda xx: net_forward(xx, params))

    out = fwd(x)
    jax.block_until_ready(out)

    # Reference mimicking the kernel's bf16 MXU operands / f32 accumulation.
    h_ref = jnp.maximum(
        jnp.dot(x.astype(jnp.bfloat16), w1.astype(jnp.bfloat16),
                preferred_element_type=jnp.float32) + b1, 0.0)
    logits_ref = jnp.dot(h_ref.astype(jnp.bfloat16), w2.astype(jnp.bfloat16),
                         preferred_element_type=jnp.float32) + b2
    ref = jax.nn.softmax(logits_ref, axis=-1)

    assert out.shape == (batch, n_output)
    # Tolerances account for bf16 matmul operands, bf16 output store, and the
    # approx (EUP) reciprocal in the softmax denominator.
    assert jnp.allclose(out, ref, atol=1e-2, rtol=1e-2)
    assert jnp.allclose(jnp.sum(out, axis=-1), 1.0, atol=1e-2)

    print("KERNEL_OK")
</pallas_src>

<mosaic_0001>
module attributes {stable_mosaic.version = 11 : i64} {
  func.func @mlp_softmax_kernel(%arg0: i32, %arg1: memref<8x32xf32, #tpu.memory_space<vmem>>, %arg2: memref<32x128xbf16, #tpu.memory_space<vmem>>, %arg3: memref<1x128xf32, #tpu.memory_space<vmem>>, %arg4: memref<128x128xbf16, #tpu.memory_space<vmem>>, %arg5: memref<1x128xf32, #tpu.memory_space<vmem>>, %arg6: memref<8x128xbf16, #tpu.memory_space<vmem>>) attributes {dimension_semantics = [#tpu.dimension_semantics<parallel>], iteration_bounds = array<i64: 1>, scalar_prefetch = 0 : i64, scratch_operands = 0 : i64, tpu.core_type = #tpu.core_type<tc>, window_params = [{transform_indices = @transform_0, window_bounds = array<i64: 8, 32>}, {pipeline_mode = #tpu.pipeline_mode<synchronous>, transform_indices = @transform_1, window_bounds = array<i64: 32, 128>}, {pipeline_mode = #tpu.pipeline_mode<synchronous>, transform_indices = @transform_2, window_bounds = array<i64: 1, 128>}, {pipeline_mode = #tpu.pipeline_mode<synchronous>, transform_indices = @transform_3, window_bounds = array<i64: 128, 128>}, {pipeline_mode = #tpu.pipeline_mode<synchronous>, transform_indices = @transform_4, window_bounds = array<i64: 1, 128>}, {transform_indices = @transform_5, window_bounds = array<i64: 8, 128>}]} {
    %c0 = arith.constant 0 : index
    %c0_0 = arith.constant 0 : index
    %0 = vector.load %arg1[%c0, %c0_0] : memref<8x32xf32, #tpu.memory_space<vmem>>, vector<8x32xf32>
    %1 = arith.truncf %0 : vector<8x32xf32> to vector<8x32xbf16>
    %c0_1 = arith.constant 0 : index
    %c0_2 = arith.constant 0 : index
    %2 = vector.load %arg2[%c0_1, %c0_2] : memref<32x128xbf16, #tpu.memory_space<vmem>>, vector<32x128xbf16>
    %cst = arith.constant dense<0.000000e+00> : vector<8x128xf32>
    %3 = tpu.matmul %1, %2, %cst {dimension_numbers = #tpu.dot_dimension_numbers<[1], [0], [0], [1], [0, 0, 1, 1], [], []>} : vector<8x32xbf16>, vector<32x128xbf16>, vector<8x128xf32> -> vector<8x128xf32>
    %c0_3 = arith.constant 0 : index
    %c0_4 = arith.constant 0 : index
    %4 = vector.load %arg3[%c0_3, %c0_4] : memref<1x128xf32, #tpu.memory_space<vmem>>, vector<1x128xf32>
    %5 = vector.broadcast %4 : vector<1x128xf32> to vector<8x128xf32>
    %6 = arith.addf %3, %5 : vector<8x128xf32>
    %cst_5 = arith.constant 0.000000e+00 : f32
    %7 = vector.broadcast %cst_5 : f32 to vector<8x128xf32>
    %8 = arith.maximumf %6, %7 : vector<8x128xf32>
    %9 = arith.truncf %8 : vector<8x128xf32> to vector<8x128xbf16>
    %c0_6 = arith.constant 0 : index
    %c0_7 = arith.constant 0 : index
    %10 = vector.load %arg4[%c0_6, %c0_7] : memref<128x128xbf16, #tpu.memory_space<vmem>>, vector<128x128xbf16>
    %cst_8 = arith.constant dense<0.000000e+00> : vector<8x128xf32>
    %11 = tpu.matmul %9, %10, %cst_8 {dimension_numbers = #tpu.dot_dimension_numbers<[1], [0], [0], [1], [0, 0, 1, 1], [], []>} : vector<8x128xbf16>, vector<128x128xbf16>, vector<8x128xf32> -> vector<8x128xf32>
    %c0_9 = arith.constant 0 : index
    %c0_10 = arith.constant 0 : index
    %12 = vector.load %arg5[%c0_9, %c0_10] : memref<1x128xf32, #tpu.memory_space<vmem>>, vector<1x128xf32>
    %13 = vector.broadcast %12 : vector<1x128xf32> to vector<8x128xf32>
    %14 = arith.addf %11, %13 : vector<8x128xf32>
    %cst_11 = arith.constant dense<0xFF800000> : vector<8xf32>
    %15 = vector.multi_reduction <maximumf>, %14, %cst_11 [1] : vector<8x128xf32> to vector<8xf32>
    %16 = vector.shape_cast %15 : vector<8xf32> to vector<8x1xf32>
    %17 = vector.broadcast %16 : vector<8x1xf32> to vector<8x128xf32>
    %18 = arith.subf %14, %17 : vector<8x128xf32>
    %19 = math.exp %18 : vector<8x128xf32>
    %cst_12 = arith.constant dense<0.000000e+00> : vector<8xf32>
    %20 = vector.multi_reduction <add>, %19, %cst_12 [1] : vector<8x128xf32> to vector<8xf32>
    %21 = vector.shape_cast %20 : vector<8xf32> to vector<8x1xf32>
    %22 = tpu.reciprocal %21 {approx = true} : vector<8x1xf32> -> vector<8x1xf32>
    %23 = vector.broadcast %22 : vector<8x1xf32> to vector<8x128xf32>
    %24 = arith.mulf %19, %23 : vector<8x128xf32>
    %25 = arith.truncf %24 : vector<8x128xf32> to vector<8x128xbf16>
    %c0_13 = arith.constant 0 : index
    %c0_14 = arith.constant 0 : index
    %26 = vector.load %arg6[%c0_13, %c0_14] : memref<8x128xbf16, #tpu.memory_space<vmem>>, vector<8x128xbf16>
    tpu.vector_store %arg6[%c0_13, %c0_14], %25 {strides = array<i32>} : memref<8x128xbf16, #tpu.memory_space<vmem>>, vector<8x128xbf16>,
    return
  }
  func.func @transform_0(%arg0: i32) -> (i32, i32) {
    %c0_i32 = arith.constant 0 : i32
    %c0_i32_0 = arith.constant 0 : i32
    return %arg0, %c0_i32 : i32, i32
  }
  func.func @transform_1(%arg0: i32) -> (i32, i32) {
    %c0_i32 = arith.constant 0 : i32
    %c0_i32_0 = arith.constant 0 : i32
    %c0_i32_1 = arith.constant 0 : i32
    return %c0_i32, %c0_i32_0 : i32, i32
  }
  func.func @transform_2(%arg0: i32) -> (i32, i32) {
    %c0_i32 = arith.constant 0 : i32
    %c0_i32_0 = arith.constant 0 : i32
    %c0_i32_1 = arith.constant 0 : i32
    return %c0_i32, %c0_i32_0 : i32, i32
  }
  func.func @transform_3(%arg0: i32) -> (i32, i32) {
    %c0_i32 = arith.constant 0 : i32
    %c0_i32_0 = arith.constant 0 : i32
    %c0_i32_1 = arith.constant 0 : i32
    return %c0_i32, %c0_i32_0 : i32, i32
  }
  func.func @transform_4(%arg0: i32) -> (i32, i32) {
    %c0_i32 = arith.constant 0 : i32
    %c0_i32_0 = arith.constant 0 : i32
    %c0_i32_1 = arith.constant 0 : i32
    return %c0_i32, %c0_i32_0 : i32, i32
  }
  func.func @transform_5(%arg0: i32) -> (i32, i32) {
    %c0_i32 = arith.constant 0 : i32
    %c0_i32_0 = arith.constant 0 : i32
    return %arg0, %c0_i32 : i32, i32
  }
}

</mosaic_0001>

<bundles_post_ra>
// kernel: _lambda_.1
= control target key start
LH: loop header
LB: loop body
LE: loop exit
PB: predicated region body
PF: predicated region fallthrough
CT: control target
= control target key end

     0   :  { %10 = vsyncpa [#allocation3], 0  ;;  %s452_s0 = inlined_call_operand.hbm [shape: f32[8,32], index: 0, kind: input, shape index: {}]   ;;  %s453_s1 = inlined_call_operand.hbm [shape: bf16[32,128], index: 1, kind: input, shape index: {}]   ;;  %s454_s2 = inlined_call_operand.vmem [shape: f32[1,128], index: 2, kind: input, shape index: {}]   ;;  %s455_s3 = inlined_call_operand.hbm [shape: bf16[128,128], index: 3, kind: input, shape index: {}]   ;;  %s456_s4 = inlined_call_operand.vmem [shape: f32[1,128], index: 4, kind: input, shape index: {}]   ;;  %s457_s5 = inlined_call_operand.vmem [shape: bf16[8,128], index: 5, kind: output, shape index: {}]  }
   0x1   :  { %11 = vsyncpa [#allocation5], 0  ;;  %s397_s18 = smov [#allocation4]  }
   0x2   :  { %s27_s19 = sshll.u32 %s397_s18, 4  ;;  %s28_s19 = int_to_ptr.vmem [resolvable:$true] %s27_s19 }
   0x3   :  { %s341_s20 = scalar_lea.vmem %s28_s19, 256  ;;  %p346_p1 = scmp.lt.s32.totalorder %s28_s19, %s28_s19 }
   0x4   :  { %p342_p0 = scmp.ne.s32.totalorder %s28_s19, %s341_s20  ;;  %p347_p2 = scmp.lt.s32.totalorder %s341_s20, %s341_s20 }
   0x6   :  { %p348_p3 = por %p347_p2, %p346_p1 }
   0x8   :  { %p349_p4 = pnand %p348_p3, %p342_p0 }
   0xa   :  { %352 = shalt.err (!%p349_p4)
}
   0xb   :  { %s398_s21 = smov 64   ;;  %s399_s22 = smov 4  }
   0xc   :  { %33 = dma.hbm_to_vmem [thread:$0]  %s453_s1, 256, %s28_s19, [#allocation5], %s398_s21, %s398_s21, %s399_s22  }
   0xd   :  { %s400_s25 = smov [#allocation2]   ;;  %s401_s27 = smov [#allocation6]  }
   0xe   :  { %s18_s26 = sshll.u32 %s400_s25, 4  ;;  %s41_s28 = sshll.u32 %s401_s27, 4  ;;  %s19_s26 = int_to_ptr.vmem [resolvable:$true] %s18_s26  ;;  %s42_s28 = int_to_ptr.vmem [resolvable:$true] %s41_s28 }
   0xf   :  { %s361_s29 = scalar_lea.vmem %s19_s26, 128  ;;  %p366_p6 = scmp.lt.s32.totalorder %s19_s26, %s19_s26 }
  0x10   :  { %p362_p5 = scmp.ne.s32.totalorder %s19_s26, %s361_s29  ;;  %p367_p7 = scmp.lt.s32.totalorder %s361_s29, %s361_s29 }
  0x12   :  { %p368_p8 = por %p367_p7, %p366_p6 }
  0x14   :  { %p369_p9 = pnand %p368_p8, %p362_p5 }
  0x16   :  { %372 = shalt.err (!%p369_p9)
}
  0x17   :  { %21 = dma.hbm_to_vmem [thread:$0]  %s452_s0, 128, %s19_s26, [#allocation3]  }
  0x18   :  { %s381_s7 = scalar_lea.vmem %s42_s28, 1024  ;;  %p386_p11 = scmp.lt.s32.totalorder %s42_s28, %s42_s28 }
  0x19   :  { %p382_p10 = scmp.ne.s32.totalorder %s42_s28, %s381_s7  ;;  %p387_p12 = scmp.lt.s32.totalorder %s381_s7, %s381_s7 }
  0x1b   :  { %p388_p13 = por %p387_p12, %p386_p11 }
  0x1d   :  { %p389_p0 = pnand %p388_p13, %p382_p10 }
  0x1f   :  { %392 = shalt.err (!%p389_p0)
}
  0x20   :  { %47 = dma.hbm_to_vmem [thread:$0]  %s455_s3, 1024, %s42_s28, [#allocation5], %s398_s21, %s398_s21, %s399_s22  }
  0x21   :  { %393 = dma.done.wait [#allocation3], 128  }
  0x22   :  { %394 = vsyncadd [#allocation3], 4294967168 }
  0x23   :  { %395 = dma.done.wait [#allocation5], 1280  }
  0x24   :  { %396 = vsyncadd [#allocation5], 4294966016  ;;  %v402_v0 = vmov 0.0   ;;  %vm403_vm0 = vmmov 0   ;;  %v319_v1 = vld [vmem:[#allocation4 + $0x8] sm:$0xff]   ;;  %v320_v2 = vld [vmem:[#allocation4] sm:$0xff]  }
  0x25   :  { %284 = vmatprep.subr.bf16.mxu0 %v402_v0  ;;  %288 = vmatprep.mubr.msk.bf16.mxu0 %vm403_vm0, %v402_v0  ;;  %v60_v3 = vld [vmem:[#allocation2] sm:$0xff]  ;;  %v321_v4 = vld [vmem:[#allocation6 + $0x38] sm:$0xff]   ;;  %v322_v6 = vld [vmem:[#allocation6 + $0x30] sm:$0xff]   ;;  %vm85_vm1 = vcmask 261120  }
  0x26   :  { %292 = vmatprep.subr.bf16.mxu1 %v402_v0  ;;  %308 = vmatprep.mubr.msk.bf16.mxu1 %vm403_vm0, %v402_v0  ;;  %v61_v5 = vpack.c.bf16 %v60_v3, %v60_v3  ;;  %v323_v7 = vld [vmem:[#allocation6 + $0x28] sm:$0xff]   ;;  %v324_v8 = vld [vmem:[#allocation6 + $0x20] sm:$0xff]   ;;  %v325_v9 = vld [vmem:[#allocation6 + $0x18] sm:$0xff]  }
  0x27   :  { %285 = vmatpush3.bf16.msra.mxu0 %v319_v1  ;;  %293 = vmatpush3.bf16.msra.mxu1 %v321_v4  ;;  %v326_v10 = vld [vmem:[#allocation6 + $0x10] sm:$0xff]   ;;  %v327_v11 = vld [vmem:[#allocation6 + $0x8] sm:$0xff]   ;;  %v328_v12 = vld [vmem:[#allocation6] sm:$0xff]  }
  0x28   :  { %286 = vmatprep.subr.bf16.mxu0 %v402_v0  ;;  %294 = vmatprep.subr.bf16.mxu1 %v402_v0  ;;  %v259_v13 = vld [vmem:[%s454_s2] ss:$0 sm:$0xff] }
  0x29   :  { %v263_v21 = vld [vmem:[%s456_s4] ss:$0 sm:$0xff] }
  0x2b   :  { %287 = vmatpush3.bf16.msra.mxu0 %v320_v2  ;;  %295 = vmatpush3.bf16.msra.mxu1 %v322_v6 }
  0x2c   :  { %296 = vmatprep.subr.bf16.mxu1 %v402_v0 }
  0x2e   :  { %289 = vmatmul.mubr.msk.bf16.vlgmr.msra.gmra.mxu0 %vm85_vm1, %v61_v5 }
  0x2f   :  { %297 = vmatpush3.bf16.msra.mxu1 %v323_v7 }
  0x30   :  { %298 = vmatprep.subr.bf16.mxu1 %v402_v0 }
  0x33   :  { %299 = vmatpush3.bf16.msra.mxu1 %v324_v8 }
  0x34   :  { %300 = vmatprep.subr.bf16.mxu1 %v402_v0 }
  0x37   :  { %301 = vmatpush3.bf16.msra.mxu1 %v325_v9 }
  0x38   :  { %302 = vmatprep.subr.bf16.mxu1 %v402_v0 }
  0x3b   :  { %303 = vmatpush3.bf16.msra.mxu1 %v326_v10 }
  0x3c   :  { %304 = vmatprep.subr.bf16.mxu1 %v402_v0 }
  0x3f   :  { %305 = vmatpush3.bf16.msra.mxu1 %v327_v11 }
  0x40   :  { %306 = vmatprep.subr.bf16.mxu1 %v402_v0 }
  0x43   :  { %307 = vmatpush3.bf16.msra.mxu1 %v328_v12 }
  0xee   :  { %v123_v14 = vpop.f32.mrf.mxu0 }
  0xef   :  { %v124_v15 = vadd.f32 %v259_v13, %v123_v14 }
  0xf0   :  { %v290_v16 = vpop.f32.mrf.mxu0 }
  0xf1   :  { %v129_v17 = vmax.f32 %v124_v15, 0.0 }
  0xf2   :  { %v126_v18 = vpop.f32.mrf.mxu0 }
  0xf3   :  { %v130_v19 = vpack.c.bf16 %v129_v17, %v129_v17 }
  0xf4   :  { %v291_v20 = vpop.f32.mrf.mxu0 }
  0xf5   :  { %309 = vmatmul.mubr.bf16.vlgmr.msra.gmra.mxu1 %v130_v19 }
 0x1b5   :  { %v236_v22 = vpop.f32.mrf.mxu1 }
 0x1b6   :  { %v237_v23 = vadd.f32 %v263_v21, %v236_v22 }
 0x1b7   :  { %v310_v24 = vpop.f32.mrf.mxu1 }
 0x1b8   :  { %242 = vmax.xlane.f32.xlu0 %v237_v23 }
 0x1b9   :  { %v239_v25 = vpop.f32.mrf.mxu1 }
 0x1bb   :  { %v311_v26 = vpop.f32.mrf.mxu1 }
 0x241   :  { %v243_v27 = vpop.xlane.xlu0 %242 }
 0x242   :  { %v244_v28 = vsub.f32 %v237_v23, %v243_v27 }
 0x244   :  { %v245_v29 = vmul.f32 1.442695, %v244_v28 }
 0x246   :  { %329 = vpow2.f32 %v245_v29 }
 0x253   :  { %v330_v30 = vpop.eup %329 }
 0x254   :  { %247 = vadd.xlane.f32.xlu0 %v330_v30 }
 0x2dd   :  { %v248_v31 = vpop.xlane.xlu0 %247 }
 0x2de   :  { %331 = vrcp.f32 %v248_v31 }
 0x2eb   :  { %v332_v32 = vpop.eup %331 }
 0x2ec   :  { %v250_v33 = vmul.f32 %v332_v32, %v330_v30 }
 0x2ee   :  { %v251_v34 = vpack.c.bf16 %v250_v33, %v250_v33 }
 0x2f0   :  { %252 = vst [vmem:[%s457_s5] sm:$0xf] %v251_v34 }
 0x2f1   :  { %257 = vsyncpa [#allocation3], 1 }
 0x2f2   :  { %258 = vsyncpa [#allocation5], 1 }

</bundles_post_ra>
